<compile_context>
chip_gen: v5e
topology: v5e:2x2
jax: 0.10.0
libtpu: 0.0.40
codegen_flags: <defaults>
</compile_context>

<pallas_src>
import jax
import jax.numpy as jnp
from jax.experimental import pallas as pl
from jax.experimental.pallas import tpu as pltpu


_SIXTH = 1.0 / 6.0


def _hardswish(x):
    # relu6(x + 3) * (1/6) * x   (multiply, not divide)
    return jnp.clip(x + 3.0, 0.0, 6.0) * _SIXTH * x


def _round_up(x, m):
    return ((x + m - 1) // m) * m


# ---------------------------------------------------------------------------
# Kernel: everything in (features, tb) "batch-on-lanes" orientation.
# Weights are in (out_features, in_features) layout, bf16; biases (out, 1) f32.
# ---------------------------------------------------------------------------
def interdpg_fwd_kernel(
    s_ref,                                   # (state_dim, tb) bf16
    ws1_ref, bs1_ref, ws2_ref, bs2_ref,      # enc_s
    wsf_ref, bd1_ref,                        # fused consumers of s_: [wd1|wd2a|wa1a]
    wdf_ref, bd2_ref,                        # fused consumers of d1: [wd2b|wa1b]
    wa1c_ref, ba1_ref,                       # dec_a linear1, d2 part
    wa2_ref, ba2_ref,                        # dec_a linear2 (sublane-padded to 8)
    out_ref,                                 # (8, tb) f32
):
    f32 = jnp.float32
    bf16 = jnp.bfloat16
    n_d1 = bd1_ref.shape[0]                  # mid_dim // 2
    n_d2 = bd2_ref.shape[0]                  # 3 * mid_dim // 4

    def mm(w_ref, x_bf16):
        # bf16 operands into the MXU, f32 accumulation.
        return jnp.dot(w_ref[...], x_bf16, preferred_element_type=f32)

    s = s_ref[...]                                              # already bf16

    # ---- enc_s: Linear -> ReLU -> Linear ---------------------------------
    h = jnp.maximum(mm(ws1_ref, s) + bs1_ref[...], 0.0)
    s_ = (mm(ws2_ref, h.astype(bf16)) + bs2_ref[...]).astype(bf16)

    # ---- DenseNet + dec_a.linear1, concat-free & matmul-fused -------------
    # One matmul for every consumer of s_ ; slice the f32 result on
    # 8-aligned sublane boundaries.
    fs = mm(wsf_ref, s_)                                        # (n_d1+n_d2+mid, tb)

    d1 = jnp.maximum(fs[:n_d1] + bd1_ref[...], 0.0).astype(bf16)
    # One matmul for every consumer of d1.
    fd = mm(wdf_ref, d1)                                        # (n_d2+mid, tb)

    d2 = _hardswish(fs[n_d1:n_d1 + n_d2] + fd[:n_d2] + bd2_ref[...]).astype(bf16)

    a1 = _hardswish(fs[n_d1 + n_d2:] + fd[n_d2:]
                    + mm(wa1c_ref, d2) + ba1_ref[...]).astype(bf16)

    # ---- dec_a.linear2 -> Tanh (sublane-padded output, lane-dense store) --
    out_ref[...] = jnp.tanh(mm(wa2_ref, a1) + ba2_ref[...])


# Kernel argument ordering (after `s`).
_ORDER = ("ws1", "bs1", "ws2", "bs2",
          "wsf", "bd1",
          "wdf", "bd2",
          "wa1c", "ba1",
          "wa2", "ba2")


def prepare_params(params, action_dim, mid_dim, sub_pad=8):
    """Transpose / fuse / pad / cast raw f32 (in, out)-layout params.

    - All weights are transposed to (out, in) layout (batch-on-lanes kernel).
    - Same-input consumers are row-concatenated so the kernel runs one matmul
      per activation: wsf = [wd1 | wd2a | wa1a] (all take s_), wdf = [wd2b |
      wa1b] (both take d1); wa1c stays separate (takes d2).
    - wa2 / ba2 are zero-padded to a multiple of 8 output rows (sublane
      alignment); the wrapper slices back to action_dim.
    - Weights cast to bf16; biases stay f32 as (out, 1) columns.
    """
    bf16 = jnp.bfloat16
    dim0 = mid_dim
    n_d1 = dim0 // 2

    wd1, wd2, wa1 = params["wd1"], params["wd2"], params["wa1"]
    wa2, ba2 = params["wa2"], params["ba2"]

    n_out_pad = _round_up(max(action_dim, sub_pad), sub_pad)
    wa2_t = jnp.zeros((n_out_pad, wa2.shape[0]), jnp.float32)
    wa2_t = wa2_t.at[:action_dim, :].set(wa2.T)
    ba2_t = jnp.zeros((n_out_pad, 1), jnp.float32).at[:action_dim, 0].set(ba2[0])

    # Fused (out, in) weights.
    wsf = jnp.concatenate([wd1.T, wd2[:dim0].T, wa1[:dim0].T], axis=0)
    wdf = jnp.concatenate([wd2[dim0:].T, wa1[dim0:dim0 + n_d1].T], axis=0)
    wa1c = wa1[dim0 + n_d1:].T

    def t_bias(b):                       # (1, out) -> (out, 1)
        return b.reshape(-1, 1)

    kp = dict(
        ws1=params["ws1"].T.astype(bf16), bs1=t_bias(params["bs1"]),
        ws2=params["ws2"].T.astype(bf16), bs2=t_bias(params["bs2"]),
        wsf=wsf.astype(bf16), bd1=t_bias(params["bd1"]),
        wdf=wdf.astype(bf16), bd2=t_bias(params["bd2"]),
        wa1c=wa1c.astype(bf16), ba1=t_bias(params["ba1"]),
        wa2=wa2_t.astype(bf16), ba2=ba2_t,
    )
    return kp, n_out_pad


def _vmem_ceiling_bytes():
    """Per-generation VMEM ceiling (~78% of physical: ~100 MiB on v5e/v6e's
    128 MiB, ~50 MiB on v7x's 64 MiB/TC)."""
    try:
        cap = int(pltpu.get_tpu_info().vmem_capacity_bytes)
    except Exception:
        cap = 64 << 20                     # conservative fallback
    return max(16 << 20, int(cap * 0.78))


def interdpg_forward(s, kernel_params, n_out_pad, action_dim, *, batch_tile=2048):
    """Pallas forward.  Batch-on-lanes layout; the batch axis is tiled
    (pipelined, "parallel" for megacore) while the weights stay VMEM-resident
    via constant index maps."""
    batch, state_dim = s.shape
    bf16 = jnp.bfloat16

    # Transpose + cast in the wrapper: kernel streams a bf16 (state_dim, tb)
    # tile with the batch on the lane axis.  Pad the batch to a 128 multiple
    # so every block (including the output store) is lane-dense / unmasked.
    s_t = s.T.astype(bf16)
    batch_p = _round_up(batch, 128)
    if batch_p != batch:
        s_t = jnp.pad(s_t, ((0, 0), (0, batch_p - batch)))

    if batch_p <= batch_tile:
        tb = batch_p
    else:
        tb = max(256, (batch_tile // 256) * 256)   # 2*128-aligned for v7x megacore
    grid = (pl.cdiv(batch_p, tb),)

    weights = [kernel_params[k] for k in _ORDER]

    in_specs = [pl.BlockSpec((state_dim, tb), lambda i: (0, i))]
    in_specs += [pl.BlockSpec(w.shape, lambda i: (0, 0)) for w in weights]
    out_spec = pl.BlockSpec((n_out_pad, tb), lambda i: (0, i))

    # VMEM budget.  Pallas double-buffers every BlockSpec input (even with a
    # constant index map), so the resident weights count twice; add the
    # double-buffered s / out tiles and a bound on compiler-managed f32
    # activation temporaries (all intermediates are (features, tb)).
    w_bytes = 2 * sum(int(w.size) * w.dtype.itemsize for w in weights)
    act_tiles = 2 * (tb * state_dim * 2 + tb * n_out_pad * 4)
    feat_rows = (sum(kernel_params[k].shape[0]
                     for k in ("bs1", "bs2", "bd1", "bd2", "ba1", "ba2"))
                 + kernel_params["wsf"].shape[0] + kernel_params["wdf"].shape[0])
    temps = feat_rows * tb * 4
    vmem_needed = w_bytes + act_tiles + temps + (2 << 20)        # + headroom
    vmem_limit = int(min(max(vmem_needed, 16 << 20), _vmem_ceiling_bytes()))

    out_t = pl.pallas_call(
        interdpg_fwd_kernel,
        out_shape=jax.ShapeDtypeStruct((n_out_pad, batch_p), jnp.float32),
        grid=grid,
        in_specs=in_specs,
        out_specs=out_spec,
        compiler_params=pltpu.CompilerParams(
            dimension_semantics=("parallel",),
            vmem_limit_bytes=vmem_limit,
        ),
    )(s_t, *weights)

    # Slice off sublane padding / batch padding and return (batch, action_dim).
    return out_t[:action_dim, :batch].T


def init_params(key, state_dim, action_dim, mid_dim):
    """Deterministic synthetic parameter init (shapes match the PyTorch module).
    Weights stored in (in_features, out_features) layout, f32."""
    assert mid_dim % 8 == 0
    dim0 = mid_dim                       # id2dim(0)
    dim1 = (3 * mid_dim) // 2            # id2dim(1)
    dim2 = (9 * mid_dim) // 4            # id2dim(2) = DenseNet out_dim

    def lin(k, fan_in, fan_out, bias_const=None, scale=0.1):
        kw, kb = jax.random.split(k)
        w = scale * jax.random.normal(kw, (fan_in, fan_out), jnp.float32)
        if bias_const is None:
            b = scale * jax.random.normal(kb, (1, fan_out), jnp.float32)
        else:
            b = jnp.full((1, fan_out), bias_const, jnp.float32)
        return w, b

    ks = jax.random.split(key, 6)
    p = {}
    # enc_s: Linear(state_dim, mid), ReLU, Linear(mid, mid)
    p["ws1"], p["bs1"] = lin(ks[0], state_dim, mid_dim)
    p["ws2"], p["bs2"] = lin(ks[1], mid_dim, mid_dim)
    # DenseNet (biases init'd to 1e-6 like _layer_norm)
    p["wd1"], p["bd1"] = lin(ks[2], dim0, dim0 // 2, bias_const=1e-6)
    p["wd2"], p["bd2"] = lin(ks[3], dim1, dim1 // 2, bias_const=1e-6)
    # dec_a: Linear(net_out_dim, mid), HardSwish, Linear(mid, action_dim), Tanh
    p["wa1"], p["ba1"] = lin(ks[4], dim2, mid_dim)
    p["wa2"], p["ba2"] = lin(ks[5], mid_dim, action_dim)
    return p


def interdpg_forward_ref(s, p):
    """Pure-JAX reference mirroring the PyTorch forward (concat formulation),
    same numerics policy as the kernel: bf16 matmul operands, f32 accumulation,
    bf16 intermediate activations."""
    bf16 = jnp.bfloat16
    mm = lambda x, w: jnp.dot(x.astype(bf16), w.astype(bf16),
                              preferred_element_type=jnp.float32)
    h = jnp.maximum(mm(s, p["ws1"]) + p["bs1"], 0.0)
    s_ = mm(h, p["ws2"]) + p["bs2"]
    d1 = jnp.maximum(mm(s_, p["wd1"]) + p["bd1"], 0.0)
    x2 = jnp.concatenate([s_, d1], axis=1)
    d2 = _hardswish(mm(x2, p["wd2"]) + p["bd2"])
    x3 = jnp.concatenate([x2, d2], axis=1)
    a1 = _hardswish(mm(x3, p["wa1"]) + p["ba1"])
    return jnp.tanh(mm(a1, p["wa2"]) + p["ba2"])


if __name__ == "__main__":
    state_dim, action_dim, mid_dim = 8, 4, 32
    batch = 2

    key = jax.random.PRNGKey(0)
    k_s, k_p = jax.random.split(key)
    s = jax.random.normal(k_s, (batch, state_dim), jnp.float32)

    raw_params = init_params(k_p, state_dim, action_dim, mid_dim)
    kernel_params, n_out_pad = prepare_params(raw_params, action_dim, mid_dim)

    a = interdpg_forward(s, kernel_params, n_out_pad, action_dim)
    a = jax.block_until_ready(a)

    a_ref = interdpg_forward_ref(s, raw_params)
    assert a.shape == (batch, action_dim)
    assert jnp.allclose(a, a_ref, atol=2e-3, rtol=2e-3), "mismatch vs reference"

    # TODO(synk): critic()/next__q_a() paths (enc_a, dec_q with spectral norm,
    # add_noise RNG) are not part of forward() and were not kernelized.
    print("KERNEL_OK")
</pallas_src>

<mosaic_0001>
module attributes {stable_mosaic.version = 11 : i64} {
  func.func @interdpg_fwd_kernel(%arg0: i32, %arg1: memref<8x128xbf16, #tpu.memory_space<vmem>>, %arg2: memref<32x8xbf16, #tpu.memory_space<vmem>>, %arg3: memref<32x1xf32, #tpu.memory_space<vmem>>, %arg4: memref<32x32xbf16, #tpu.memory_space<vmem>>, %arg5: memref<32x1xf32, #tpu.memory_space<vmem>>, %arg6: memref<72x32xbf16, #tpu.memory_space<vmem>>, %arg7: memref<16x1xf32, #tpu.memory_space<vmem>>, %arg8: memref<56x16xbf16, #tpu.memory_space<vmem>>, %arg9: memref<24x1xf32, #tpu.memory_space<vmem>>, %arg10: memref<32x24xbf16, #tpu.memory_space<vmem>>, %arg11: memref<32x1xf32, #tpu.memory_space<vmem>>, %arg12: memref<8x32xbf16, #tpu.memory_space<vmem>>, %arg13: memref<8x1xf32, #tpu.memory_space<vmem>>, %arg14: memref<8x128xf32, #tpu.memory_space<vmem>>) attributes {dimension_semantics = [#tpu.dimension_semantics<parallel>], iteration_bounds = array<i64: 1>, scalar_prefetch = 0 : i64, scratch_operands = 0 : i64, tpu.core_type = #tpu.core_type<tc>, window_params = [{transform_indices = @transform_0, window_bounds = array<i64: 8, 128>}, {pipeline_mode = #tpu.pipeline_mode<synchronous>, transform_indices = @transform_1, window_bounds = array<i64: 32, 8>}, {pipeline_mode = #tpu.pipeline_mode<synchronous>, transform_indices = @transform_2, window_bounds = array<i64: 32, 1>}, {pipeline_mode = #tpu.pipeline_mode<synchronous>, transform_indices = @transform_3, window_bounds = array<i64: 32, 32>}, {pipeline_mode = #tpu.pipeline_mode<synchronous>, transform_indices = @transform_4, window_bounds = array<i64: 32, 1>}, {pipeline_mode = #tpu.pipeline_mode<synchronous>, transform_indices = @transform_5, window_bounds = array<i64: 72, 32>}, {pipeline_mode = #tpu.pipeline_mode<synchronous>, transform_indices = @transform_6, window_bounds = array<i64: 16, 1>}, {pipeline_mode = #tpu.pipeline_mode<synchronous>, transform_indices = @transform_7, window_bounds = array<i64: 56, 16>}, {pipeline_mode = #tpu.pipeline_mode<synchronous>, transform_indices = @transform_8, window_bounds = array<i64: 24, 1>}, {pipeline_mode = #tpu.pipeline_mode<synchronous>, transform_indices = @transform_9, window_bounds = array<i64: 32, 24>}, {pipeline_mode = #tpu.pipeline_mode<synchronous>, transform_indices = @transform_10, window_bounds = array<i64: 32, 1>}, {pipeline_mode = #tpu.pipeline_mode<synchronous>, transform_indices = @transform_11, window_bounds = array<i64: 8, 32>}, {pipeline_mode = #tpu.pipeline_mode<synchronous>, transform_indices = @transform_12, window_bounds = array<i64: 8, 1>}, {transform_indices = @transform_13, window_bounds = array<i64: 8, 128>}]} {
    %c0 = arith.constant 0 : index
    %c0_0 = arith.constant 0 : index
    %0 = vector.load %arg1[%c0, %c0_0] : memref<8x128xbf16, #tpu.memory_space<vmem>>, vector<8x128xbf16>
    %c0_1 = arith.constant 0 : index
    %c0_2 = arith.constant 0 : index
    %1 = vector.load %arg2[%c0_1, %c0_2] : memref<32x8xbf16, #tpu.memory_space<vmem>>, vector<32x8xbf16>
    %cst = arith.constant dense<0.000000e+00> : vector<32x128xf32>
    %2 = tpu.matmul %1, %0, %cst {dimension_numbers = #tpu.dot_dimension_numbers<[1], [0], [0], [1], [0, 0, 1, 1], [], []>} : vector<32x8xbf16>, vector<8x128xbf16>, vector<32x128xf32> -> vector<32x128xf32>
    %c0_3 = arith.constant 0 : index
    %c0_4 = arith.constant 0 : index
    %3 = vector.load %arg3[%c0_3, %c0_4] : memref<32x1xf32, #tpu.memory_space<vmem>>, vector<32x1xf32>
    %4 = vector.broadcast %3 : vector<32x1xf32> to vector<32x128xf32>
    %5 = arith.addf %2, %4 : vector<32x128xf32>
    %cst_5 = arith.constant 0.000000e+00 : f32
    %6 = vector.broadcast %cst_5 : f32 to vector<32x128xf32>
    %7 = arith.maximumf %5, %6 : vector<32x128xf32>
    %8 = arith.truncf %7 : vector<32x128xf32> to vector<32x128xbf16>
    %c0_6 = arith.constant 0 : index
    %c0_7 = arith.constant 0 : index
    %9 = vector.load %arg4[%c0_6, %c0_7] : memref<32x32xbf16, #tpu.memory_space<vmem>>, vector<32x32xbf16>
    %cst_8 = arith.constant dense<0.000000e+00> : vector<32x128xf32>
    %10 = tpu.matmul %9, %8, %cst_8 {dimension_numbers = #tpu.dot_dimension_numbers<[1], [0], [0], [1], [0, 0, 1, 1], [], []>} : vector<32x32xbf16>, vector<32x128xbf16>, vector<32x128xf32> -> vector<32x128xf32>
    %c0_9 = arith.constant 0 : index
    %c0_10 = arith.constant 0 : index
    %11 = vector.load %arg5[%c0_9, %c0_10] : memref<32x1xf32, #tpu.memory_space<vmem>>, vector<32x1xf32>
    %12 = vector.broadcast %11 : vector<32x1xf32> to vector<32x128xf32>
    %13 = arith.addf %10, %12 : vector<32x128xf32>
    %14 = arith.truncf %13 : vector<32x128xf32> to vector<32x128xbf16>
    %c0_11 = arith.constant 0 : index
    %c0_12 = arith.constant 0 : index
    %15 = vector.load %arg6[%c0_11, %c0_12] : memref<72x32xbf16, #tpu.memory_space<vmem>>, vector<72x32xbf16>
    %cst_13 = arith.constant dense<0.000000e+00> : vector<72x128xf32>
    %16 = tpu.matmul %15, %14, %cst_13 {dimension_numbers = #tpu.dot_dimension_numbers<[1], [0], [0], [1], [0, 0, 1, 1], [], []>} : vector<72x32xbf16>, vector<32x128xbf16>, vector<72x128xf32> -> vector<72x128xf32>
    %17 = vector.extract_strided_slice %16 {offsets = [0, 0], sizes = [16, 128], strides = [1, 1]} : vector<72x128xf32> to vector<16x128xf32>
    %c0_14 = arith.constant 0 : index
    %c0_15 = arith.constant 0 : index
    %18 = vector.load %arg7[%c0_14, %c0_15] : memref<16x1xf32, #tpu.memory_space<vmem>>, vector<16x1xf32>
    %19 = vector.broadcast %18 : vector<16x1xf32> to vector<16x128xf32>
    %20 = arith.addf %17, %19 : vector<16x128xf32>
    %cst_16 = arith.constant 0.000000e+00 : f32
    %21 = vector.broadcast %cst_16 : f32 to vector<16x128xf32>
    %22 = arith.maximumf %20, %21 : vector<16x128xf32>
    %23 = arith.truncf %22 : vector<16x128xf32> to vector<16x128xbf16>
    %c0_17 = arith.constant 0 : index
    %c0_18 = arith.constant 0 : index
    %24 = vector.load %arg8[%c0_17, %c0_18] : memref<56x16xbf16, #tpu.memory_space<vmem>>, vector<56x16xbf16>
    %cst_19 = arith.constant dense<0.000000e+00> : vector<56x128xf32>
    %25 = tpu.matmul %24, %23, %cst_19 {dimension_numbers = #tpu.dot_dimension_numbers<[1], [0], [0], [1], [0, 0, 1, 1], [], []>} : vector<56x16xbf16>, vector<16x128xbf16>, vector<56x128xf32> -> vector<56x128xf32>
    %26 = vector.extract_strided_slice %16 {offsets = [16, 0], sizes = [24, 128], strides = [1, 1]} : vector<72x128xf32> to vector<24x128xf32>
    %27 = vector.extract_strided_slice %25 {offsets = [0, 0], sizes = [24, 128], strides = [1, 1]} : vector<56x128xf32> to vector<24x128xf32>
    %28 = arith.addf %26, %27 : vector<24x128xf32>
    %c0_20 = arith.constant 0 : index
    %c0_21 = arith.constant 0 : index
    %29 = vector.load %arg9[%c0_20, %c0_21] : memref<24x1xf32, #tpu.memory_space<vmem>>, vector<24x1xf32>
    %30 = vector.broadcast %29 : vector<24x1xf32> to vector<24x128xf32>
    %31 = arith.addf %28, %30 : vector<24x128xf32>
    %cst_22 = arith.constant 3.000000e+00 : f32
    %32 = vector.broadcast %cst_22 : f32 to vector<24x128xf32>
    %33 = arith.addf %31, %32 : vector<24x128xf32>
    %cst_23 = arith.constant 0.000000e+00 : f32
    %cst_24 = arith.constant 6.000000e+00 : f32
    %34 = vector.broadcast %cst_23 : f32 to vector<24x128xf32>
    %35 = arith.maximumf %34, %33 : vector<24x128xf32>
    %36 = vector.broadcast %cst_24 : f32 to vector<24x128xf32>
    %37 = arith.minimumf %36, %35 : vector<24x128xf32>
    %cst_25 = arith.constant 0.166666672 : f32
    %38 = vector.broadcast %cst_25 : f32 to vector<24x128xf32>
    %39 = arith.mulf %37, %38 : vector<24x128xf32>
    %40 = arith.mulf %39, %31 : vector<24x128xf32>
    %41 = arith.truncf %40 : vector<24x128xf32> to vector<24x128xbf16>
    %42 = vector.extract_strided_slice %16 {offsets = [40, 0], sizes = [32, 128], strides = [1, 1]} : vector<72x128xf32> to vector<32x128xf32>
    %43 = vector.extract_strided_slice %25 {offsets = [24, 0], sizes = [32, 128], strides = [1, 1]} : vector<56x128xf32> to vector<32x128xf32>
    %44 = arith.addf %42, %43 : vector<32x128xf32>
    %c0_26 = arith.constant 0 : index
    %c0_27 = arith.constant 0 : index
    %45 = vector.load %arg10[%c0_26, %c0_27] : memref<32x24xbf16, #tpu.memory_space<vmem>>, vector<32x24xbf16>
    %cst_28 = arith.constant dense<0.000000e+00> : vector<32x128xf32>
    %46 = tpu.matmul %45, %41, %cst_28 {dimension_numbers = #tpu.dot_dimension_numbers<[1], [0], [0], [1], [0, 0, 1, 1], [], []>} : vector<32x24xbf16>, vector<24x128xbf16>, vector<32x128xf32> -> vector<32x128xf32>
    %47 = arith.addf %44, %46 : vector<32x128xf32>
    %c0_29 = arith.constant 0 : index
    %c0_30 = arith.constant 0 : index
    %48 = vector.load %arg11[%c0_29, %c0_30] : memref<32x1xf32, #tpu.memory_space<vmem>>, vector<32x1xf32>
    %49 = vector.broadcast %48 : vector<32x1xf32> to vector<32x128xf32>
    %50 = arith.addf %47, %49 : vector<32x128xf32>
    %cst_31 = arith.constant 3.000000e+00 : f32
    %51 = vector.broadcast %cst_31 : f32 to vector<32x128xf32>
    %52 = arith.addf %50, %51 : vector<32x128xf32>
    %cst_32 = arith.constant 0.000000e+00 : f32
    %cst_33 = arith.constant 6.000000e+00 : f32
    %53 = vector.broadcast %cst_32 : f32 to vector<32x128xf32>
    %54 = arith.maximumf %53, %52 : vector<32x128xf32>
    %55 = vector.broadcast %cst_33 : f32 to vector<32x128xf32>
    %56 = arith.minimumf %55, %54 : vector<32x128xf32>
    %cst_34 = arith.constant 0.166666672 : f32
    %57 = vector.broadcast %cst_34 : f32 to vector<32x128xf32>
    %58 = arith.mulf %56, %57 : vector<32x128xf32>
    %59 = arith.mulf %58, %50 : vector<32x128xf32>
    %60 = arith.truncf %59 : vector<32x128xf32> to vector<32x128xbf16>
    %c0_35 = arith.constant 0 : index
    %c0_36 = arith.constant 0 : index
    %61 = vector.load %arg12[%c0_35, %c0_36] : memref<8x32xbf16, #tpu.memory_space<vmem>>, vector<8x32xbf16>
    %cst_37 = arith.constant dense<0.000000e+00> : vector<8x128xf32>
    %62 = tpu.matmul %61, %60, %cst_37 {dimension_numbers = #tpu.dot_dimension_numbers<[1], [0], [0], [1], [0, 0, 1, 1], [], []>} : vector<8x32xbf16>, vector<32x128xbf16>, vector<8x128xf32> -> vector<8x128xf32>
    %c0_38 = arith.constant 0 : index
    %c0_39 = arith.constant 0 : index
    %63 = vector.load %arg13[%c0_38, %c0_39] : memref<8x1xf32, #tpu.memory_space<vmem>>, vector<8x1xf32>
    %64 = vector.broadcast %63 : vector<8x1xf32> to vector<8x128xf32>
    %65 = arith.addf %62, %64 : vector<8x128xf32>
    %66 = math.tanh %65 : vector<8x128xf32>
    %c0_40 = arith.constant 0 : index
    %c0_41 = arith.constant 0 : index
    %67 = vector.load %arg14[%c0_40, %c0_41] : memref<8x128xf32, #tpu.memory_space<vmem>>, vector<8x128xf32>
    tpu.vector_store %arg14[%c0_40, %c0_41], %66 {strides = array<i32>} : memref<8x128xf32, #tpu.memory_space<vmem>>, vector<8x128xf32>,
    return
  }
  func.func @transform_0(%arg0: i32) -> (i32, i32) {
    %c0_i32 = arith.constant 0 : i32
    %c0_i32_0 = arith.constant 0 : i32
    return %c0_i32, %arg0 : i32, i32
  }
  func.func @transform_1(%arg0: i32) -> (i32, i32) {
    %c0_i32 = arith.constant 0 : i32
    %c0_i32_0 = arith.constant 0 : i32
    %c0_i32_1 = arith.constant 0 : i32
    return %c0_i32, %c0_i32_0 : i32, i32
  }
  func.func @transform_2(%arg0: i32) -> (i32, i32) {
    %c0_i32 = arith.constant 0 : i32
    %c0_i32_0 = arith.constant 0 : i32
    %c0_i32_1 = arith.constant 0 : i32
    return %c0_i32, %c0_i32_0 : i32, i32
  }
  func.func @transform_3(%arg0: i32) -> (i32, i32) {
    %c0_i32 = arith.constant 0 : i32
    %c0_i32_0 = arith.constant 0 : i32
    %c0_i32_1 = arith.constant 0 : i32
    return %c0_i32, %c0_i32_0 : i32, i32
  }
  func.func @transform_4(%arg0: i32) -> (i32, i32) {
    %c0_i32 = arith.constant 0 : i32
    %c0_i32_0 = arith.constant 0 : i32
    %c0_i32_1 = arith.constant 0 : i32
    return %c0_i32, %c0_i32_0 : i32, i32
  }
  func.func @transform_5(%arg0: i32) -> (i32, i32) {
    %c0_i32 = arith.constant 0 : i32
    %c0_i32_0 = arith.constant 0 : i32
    %c0_i32_1 = arith.constant 0 : i32
    return %c0_i32, %c0_i32_0 : i32, i32
  }
  func.func @transform_6(%arg0: i32) -> (i32, i32) {
    %c0_i32 = arith.constant 0 : i32
    %c0_i32_0 = arith.constant 0 : i32
    %c0_i32_1 = arith.constant 0 : i32
    return %c0_i32, %c0_i32_0 : i32, i32
  }
  func.func @transform_7(%arg0: i32) -> (i32, i32) {
    %c0_i32 = arith.constant 0 : i32
    %c0_i32_0 = arith.constant 0 : i32
    %c0_i32_1 = arith.constant 0 : i32
    return %c0_i32, %c0_i32_0 : i32, i32
  }
  func.func @transform_8(%arg0: i32) -> (i32, i32) {
    %c0_i32 = arith.constant 0 : i32
    %c0_i32_0 = arith.constant 0 : i32
    %c0_i32_1 = arith.constant 0 : i32
    return %c0_i32, %c0_i32_0 : i32, i32
  }
  func.func @transform_9(%arg0: i32) -> (i32, i32) {
    %c0_i32 = arith.constant 0 : i32
    %c0_i32_0 = arith.constant 0 : i32
    %c0_i32_1 = arith.constant 0 : i32
    return %c0_i32, %c0_i32_0 : i32, i32
  }
  func.func @transform_10(%arg0: i32) -> (i32, i32) {
    %c0_i32 = arith.constant 0 : i32
    %c0_i32_0 = arith.constant 0 : i32
    %c0_i32_1 = arith.constant 0 : i32
    return %c0_i32, %c0_i32_0 : i32, i32
  }
  func.func @transform_11(%arg0: i32) -> (i32, i32) {
    %c0_i32 = arith.constant 0 : i32
    %c0_i32_0 = arith.constant 0 : i32
    %c0_i32_1 = arith.constant 0 : i32
    return %c0_i32, %c0_i32_0 : i32, i32
  }
  func.func @transform_12(%arg0: i32) -> (i32, i32) {
    %c0_i32 = arith.constant 0 : i32
    %c0_i32_0 = arith.constant 0 : i32
    %c0_i32_1 = arith.constant 0 : i32
    return %c0_i32, %c0_i32_0 : i32, i32
  }
  func.func @transform_13(%arg0: i32) -> (i32, i32) {
    %c0_i32 = arith.constant 0 : i32
    %c0_i32_0 = arith.constant 0 : i32
    return %c0_i32, %arg0 : i32, i32
  }
}

</mosaic_0001>

<bundles_post_ra>
// kernel: tpu_custom_call.1
= control target key start
LH: loop header
LB: loop body
LE: loop exit
PB: predicated region body
PF: predicated region fallthrough
CT: control target
= control target key end

     0   :  { %vm92_vm0 = vcmask 1043456   ;;  %v649_v3 = vmov 0   ;;  %vm85_vm1 = vcmask 64512   ;;  %s843_s0 = inlined_call_operand.vmem [shape: bf16[8,128], index: 0, kind: input, shape index: {}]   ;;  %s844_s1 = inlined_call_operand.vmem [shape: bf16[32,8], index: 1, kind: input, shape index: {}]   ;;  %s845_s2 = inlined_call_operand.vmem [shape: f32[32,1], index: 2, kind: input, shape index: {}]   ;;  %s846_s3 = inlined_call_operand.vmem [shape: bf16[32,32], index: 3, kind: input, shape index: {}]   ;;  %s847_s4 = inlined_call_operand.vmem [shape: f32[32,1], index: 4, kind: input, shape index: {}]   ;;  %s848_s5 = inlined_call_operand.vmem [shape: bf16[72,32], index: 5, kind: input, shape index: {}]   ;;  %s849_s6 = inlined_call_operand.vmem [shape: f32[16,1], index: 6, kind: input, shape index: {}]   ;;  %s850_s7 = inlined_call_operand.vmem [shape: bf16[56,16], index: 7, kind: input, shape index: {}]   ;;  %s851_s8 = inlined_call_operand.vmem [shape: f32[24,1], index: 8, kind: input, shape index: {}]   ;;  %s852_s9 = inlined_call_operand.vmem [shape: bf16[32,24], index: 9, kind: input, shape index: {}]   ;;  %s853_s10 = inlined_call_operand.vmem [shape: f32[32,1], index: 10, kind: input, shape index: {}]   ;;  %s854_s11 = inlined_call_operand.vmem [shape: bf16[8,32], index: 11, kind: input, shape index: {}]   ;;  %s855_s12 = inlined_call_operand.vmem [shape: f32[8,1], index: 12, kind: input, shape index: {}]   ;;  %s856_s13 = inlined_call_operand.hbm [shape: f32[8,128], index: 13, kind: output, shape index: {}]  }
   0x1   :  { %v53_v0 = vld [vmem:[%s845_s2 + $0x10] sm:$0xff]  ;;  %v51_v1 = vld [vmem:[%s845_s2] sm:$0xff]  ;;  %619 = vset.pattern.permute.xlu1 %v649_v3  ;;  %618 = vset.pattern.permute.xlu0 %v649_v3 }
   0x2   :  { %v46_v2 = vld [vmem:[%s843_s0] sm:$0xf]  ;;  %67 = vperm.xlu0 %618, %v53_v0   ;;  %57 = vperm.xlu1 %619, %v51_v1  }
   0x3   :  { %v94_v4 = vsel %vm92_vm0, %v46_v2, 0  ;;  %v601_v5 = vld [vmem:[%s844_s1] sm:$0xff]  ;;  %620 = vset.pattern.permute.xlu2 %v649_v3 }
   0x4   :  { %103 = vmatpush.bf16.msra.mxu0 %v94_v4 }
   0x5   :  { %18 = vsyncpa [#allocation3], 0  ;;  %v54_v6 = vld [vmem:[%s845_s2 + $0x18] sm:$0xff]  ;;  %v52_v7 = vld [vmem:[%s845_s2 + $0x8] sm:$0xff]  ;;  %vm159_vm2 = vcmask 261120   ;;  %vm309_vm3 = vcmask 130048  }
   0x6   :  { %v125_v8 = vld [vmem:[%s847_s4] sm:$0xff]  ;;  %v126_v9 = vld [vmem:[%s847_s4 + $0x8] sm:$0xff]  ;;  %v355_v12 = vld [vmem:[%s851_s8 + $0x10] sm:$0xff]  ;;  %vm409_vm4 = vcmask 195584   ;;  %s650_s26 = smov [#allocation2]   ;;  %s524_s29 = sshll.u32 %s856_s13, 4  ;;  %s525_s29 = int_to_ptr.hbm [resolvable:$true] %s524_s29 }
   0x7   :  { %541 = vmatmul.msk.bf16.vlgmr.msra.gmra.mxu0 %vm85_vm1, %v601_v5  ;;  %v602_v10 = vld [vmem:[%s844_s1 + $0x8] sm:$0xff]  ;;  %v444_v14 = vld [vmem:[%s853_s10 + $0x10] sm:$0xff]  ;;  %v442_v15 = vld [vmem:[%s853_s10] sm:$0xff]  ;;  %s522_s2 = sshll.u32 %s650_s26, 4  ;;  %s523_s2 = int_to_ptr.vmem [resolvable:$true] %s522_s2 }
   0x8   :  { %v268_v11 = vld [vmem:[%s849_s6 + $0x8] sm:$0xff]  ;;  %v127_v18 = vld [vmem:[%s847_s4 + $0x10] sm:$0xff]  ;;  %v128_v23 = vld [vmem:[%s847_s4 + $0x18] sm:$0xff] }
   0x9   :  { %v354_v13 = vld [vmem:[%s851_s8 + $0x8] sm:$0xff]  ;;  %141 = vperm.xlu2 %620, %v127_v18   ;;  %v267_v33 = vld [vmem:[%s849_s6] sm:$0xff]  ;;  %v445_v40 = vld [vmem:[%s853_s10 + $0x18] sm:$0xff] }
   0xa   :  { %72 = vperm.xlu0 %618, %v54_v6   ;;  %62 = vperm.xlu1 %619, %v52_v7   ;;  %v443_v16 = vld [vmem:[%s853_s10 + $0x8] sm:$0xff]  ;;  %v603_v38 = vld [vmem:[%s846_s3] sm:$0xff]  ;;  %v607_v59 = vld [vmem:[%s848_s5 + $0x10] sm:$0xff] }
   0xb   :  { %v353_v39 = vld [vmem:[%s851_s8] sm:$0xff]  ;;  %v604_v41 = vld [vmem:[%s846_s3 + $0x8] sm:$0xff] }
   0xc   :  { %v493_v42 = vld [vmem:[%s855_s12] sm:$0xff]  ;;  %v606_v58 = vld [vmem:[%s848_s5 + $0x8] sm:$0xff] }
   0xd   :  { %v605_v57 = vld [vmem:[%s848_s5] sm:$0xff]  ;;  %v610_v6 = vld [vmem:[%s850_s7 + $0x8] sm:$0xff] }
   0xe   :  { %v609_v5 = vld [vmem:[%s850_s7] sm:$0xff] }
  0x11   :  { %146 = vperm.xlu2 %620, %v128_v23  }
  0x12   :  { %131 = vperm.xlu0 %618, %v125_v8   ;;  %136 = vperm.xlu1 %619, %v126_v9   ;;  %v608_v8 = vld [vmem:[%s848_s5 + $0x18] sm:$0xff]  ;;  %v611_v9 = vld [vmem:[%s850_s7 + $0x10] sm:$0xff] }
  0x17   :  { %542 = vmatmul.msk.bf16.gmra.mxu0 %vm85_vm1, %v602_v10 }
  0x19   :  { %271 = vperm.xlu2 %620, %v267_v33  }
  0x1a   :  { %276 = vperm.xlu0 %618, %v268_v11   ;;  %368 = vperm.xlu1 %619, %v355_v12  }
  0x21   :  { %358 = vperm.xlu2 %620, %v353_v39  }
  0x22   :  { %363 = vperm.xlu0 %618, %v354_v13   ;;  %458 = vperm.xlu1 %619, %v444_v14   ;;  %v195_v14 = vld [vmem:[%s848_s5 + $0x20] sm:$0xf] }
  0x29   :  { %463 = vperm.xlu2 %620, %v445_v40  }
  0x2a   :  { %448 = vperm.xlu0 %618, %v442_v15   ;;  %453 = vperm.xlu1 %619, %v443_v16   ;;  %v290_v15 = vld [vmem:[%s850_s7 + $0x18] sm:$0xf] }
  0x2b   :  { %v304_v18 = vunpack.c.l.b16 %v290_v15 }
  0x2d   :  { %v308_v23 = vpack.c.b16 %v304_v18, %v304_v18 }
  0x31   :  { %496 = vperm.xlu2 %620, %v493_v42  }
  0x63   :  { %v142_v45 = vpop.permute.xlu2 %141 }
  0x6b   :  { %v147_v47 = vpop.permute.xlu2 %146 }
  0x73   :  { %v272_v61 = vpop.permute.xlu2 %271 }
  0x74   :  { %v68_v20 = vpop.permute.xlu0 %67  ;;  %v58_v21 = vpop.permute.xlu1 %57 }
  0x7c   :  { %v73_v24 = vpop.permute.xlu0 %72  ;;  %v63_v26 = vpop.permute.xlu1 %62 }
  0x84   :  { %v105_v17 = vpop.f32.mrf.mxu0  ;;  %v137_v51 = vpop.permute.xlu1 %136 }
  0x85   :  { %v106_v30 = vadd.f32 %v105_v17, %v58_v21  ;;  %v132_v54 = vpop.permute.xlu0 %131  ;;  %v213_v17 = vunpack.c.l.b16 %v195_v14  ;;  %v359_v21 = vpop.permute.xlu2 %358 }
  0x87   :  { %v115_v36 = vmax.f32 %v106_v30, 0.0 }
  0x8c   :  { %v107_v19 = vpop.f32.mrf.mxu0 }
  0x8d   :  { %v108_v28 = vadd.f32 %v107_v19, %v63_v26  ;;  %v277_v63 = vpop.permute.xlu0 %276  ;;  %v464_v18 = vpop.permute.xlu2 %463 }
  0x8f   :  { %v116_v34 = vmax.f32 %v108_v28, 0.0 }
  0x91   :  { %v119_v37 = vpack.c.bf16 %v116_v34, %v115_v36 }
  0x94   :  { %v110_v22 = vpop.f32.mrf.mxu0 }
  0x95   :  { %v111_v25 = vadd.f32 %v110_v22, %v68_v20  ;;  %v364_v19 = vpop.permute.xlu0 %363  ;;  %v218_v22 = vpack.c.b16 %v213_v17, %v213_v17 }
  0x97   :  { %v117_v31 = vmax.f32 %v111_v25, 0.0 }
  0x9c   :  { %v112_v27 = vpop.f32.mrf.mxu0 }
  0x9d   :  { %v113_v29 = vadd.f32 %v112_v27, %v73_v24 }
  0x9f   :  { %v118_v32 = vmax.f32 %v113_v29, 0.0  ;;  %v369_v29 = vpop.permute.xlu1 %368 }
  0xa1   :  { %v120_v35 = vpack.c.bf16 %v118_v32, %v117_v31 }
  0xa3   :  { %172 = vmatpush.bf16.msra.mxu1 %v120_v35 }
  0xa7   :  { %173 = vmatpush.bf16.msra.mxu1 %v119_v37 }
  0xaa   :  { %551 = vmatmul.msk.bf16.vlgmr.msra.gmra.mxu1 %vm159_vm2, %v603_v38 }
  0xba   :  { %552 = vmatmul.msk.bf16.gmra.mxu1 %vm159_vm2, %v604_v41 }
 0x127   :  { %v175_v43 = vpop.f32.mrf.mxu1 }
 0x128   :  { %v176_v55 = vadd.f32 %v175_v43, %v132_v54 }
 0x12f   :  { %v177_v44 = vpop.f32.mrf.mxu1 }
 0x130   :  { %v178_v52 = vadd.f32 %v177_v44, %v137_v51  ;;  %v612_v51 = vld [vmem:[%s852_s9] sm:$0xff] }
 0x132   :  { %v185_v56 = vpack.c.bf16 %v178_v52, %v176_v55  ;;  %v613_v52 = vld [vmem:[%s852_s9 + $0x8] sm:$0xff] }
 0x137   :  { %v180_v46 = vpop.f32.mrf.mxu1 }
 0x138   :  { %v181_v49 = vadd.f32 %v180_v46, %v142_v45 }
 0x13f   :  { %v182_v48 = vpop.f32.mrf.mxu1 }
 0x140   :  { %v183_v50 = vadd.f32 %v182_v48, %v147_v47 }
 0x142   :  { %v186_v53 = vpack.c.bf16 %v183_v50, %v181_v49 }
 0x144   :  { %240 = vmatpush.bf16.msrb.mxu1 %v186_v53  ;;  %614 = vmatpush.bf16.msra.mxu2 %v186_v53 }
 0x148   :  { %241 = vmatpush.bf16.msrb.mxu1 %v185_v56  ;;  %615 = vmatpush.bf16.msra.mxu2 %v185_v56 }
 0x14b   :  { %569 = vmatmul.msk.bf16.vlgmr.msrb.gmra.mxu1 %vm159_vm2, %v605_v57  ;;  %570 = vmatmul.msk.bf16.vlgmr.msra.gmra.mxu2 %vm159_vm2, %v606_v58 }
 0x15b   :  { %571 = vmatmul.msk.bf16.gmra.mxu2 %vm159_vm2, %v607_v59 }
 0x16b   :  { %572 = vmatmul.msk.bf16.gmra.mxu2 %vm159_vm2, %v608_v8 }
 0x17b   :  { %573 = vmatmul.msk.bf16.gmra.mxu2 %vm159_vm2, %v218_v22 }
 0x1c8   :  { %v243_v60 = vpop.f32.mrf.mxu1 }
 0x1c9   :  { %v279_v62 = vadd.f32 %v272_v61, %v243_v60 }
 0x1cb   :  { %v281_v2 = vmax.f32 %v279_v62, 0.0  ;;  %v459_v62 = vpop.permute.xlu1 %458 }
 0x1ce   :  { %v248_v7 = vpop.f32.mrf.mxu2 }
 0x1d0   :  { %v245_v0 = vpop.f32.mrf.mxu1 }
 0x1d1   :  { %v280_v1 = vadd.f32 %v277_v63, %v245_v0 }
 0x1d3   :  { %v282_v3 = vmax.f32 %v280_v1, 0.0 }
 0x1d5   :  { %v283_v4 = vpack.c.bf16 %v282_v3, %v281_v2 }
 0x1d6   :  { %v250_v11 = vpop.f32.mrf.mxu2 }
 0x1d7   :  { %329 = vmatpush.bf16.msra.mxu3 %v283_v4 }
 0x1da   :  { %586 = vmatmul.msk.bf16.vlgmr.msra.gmra.mxu3 %vm309_vm3, %v609_v5 }
 0x1de   :  { %v253_v25 = vpop.f32.mrf.mxu2 }
 0x1e6   :  { %v255_v37 = vpop.f32.mrf.mxu2 }
 0x1ea   :  { %587 = vmatmul.msk.bf16.gmra.mxu3 %vm309_vm3, %v610_v6  ;;  %v454_v6 = vpop.permute.xlu1 %453 }
 0x1ee   :  { %v258_v53 = vpop.f32.mrf.mxu2 }
 0x1f6   :  { %v260_v55 = vpop.f32.mrf.mxu2 }
 0x1fa   :  { %588 = vmatmul.msk.bf16.gmra.mxu3 %vm309_vm3, %v611_v9  ;;  %v449_v9 = vpop.permute.xlu0 %448 }
 0x1fe   :  { %v263_v57 = vpop.f32.mrf.mxu2 }
 0x206   :  { %v265_v59 = vpop.f32.mrf.mxu2 }
 0x20a   :  { %589 = vmatmul.msk.bf16.gmra.mxu3 %vm309_vm3, %v308_v23 }
 0x25d   :  { %v331_v10 = vpop.f32.mrf.mxu3 }
 0x25e   :  { %v350_v16 = vadd.f32 %v331_v10, %v248_v7 }
 0x260   :  { %v371_v24 = vadd.f32 %v359_v21, %v350_v16 }
 0x262   :  { %v374_v30 = vadd.f32 3.0, %v371_v24 }
 0x264   :  { %v377_v34 = vmax.f32 %v374_v30, 0.0 }
 0x265   :  { %v333_v12 = vpop.f32.mrf.mxu3 }
 0x266   :  { %v351_v13 = vadd.f32 %v333_v12, %v250_v11  ;;  %v380_v41 = vmin.f32 %v377_v34, 6.0 }
 0x268   :  { %v372_v20 = vadd.f32 %v364_v19, %v351_v13  ;;  %v383_v45 = vmul.f32 0.16666667, %v380_v41 }
 0x26a   :  { %v375_v26 = vadd.f32 3.0, %v372_v20  ;;  %v386_v49 = vmul.f32 %v383_v45, %v371_v24 }
 0x26c   :  { %v378_v32 = vmax.f32 %v375_v26, 0.0 }
 0x26d   :  { %v336_v27 = vpop.f32.mrf.mxu3 }
 0x26e   :  { %v352_v28 = vadd.f32 %v336_v27, %v253_v25  ;;  %v381_v36 = vmin.f32 %v378_v32, 6.0 }
 0x270   :  { %v373_v31 = vadd.f32 %v369_v29, %v352_v28  ;;  %v384_v43 = vmul.f32 0.16666667, %v381_v36 }
 0x272   :  { %v376_v33 = vadd.f32 3.0, %v373_v31  ;;  %v387_v47 = vmul.f32 %v384_v43, %v372_v20 }
 0x274   :  { %v379_v35 = vmax.f32 %v376_v33, 0.0  ;;  %v389_v50 = vpack.c.bf16 %v387_v47, %v386_v49 }
 0x275   :  { %v338_v38 = vpop.f32.mrf.mxu3 }
 0x276   :  { %v391_v39 = vadd.f32 %v338_v38, %v255_v37  ;;  %v382_v40 = vmin.f32 %v379_v35, 6.0  ;;  %v492_v38 = vld [vmem:[%s854_s11] sm:$0xf] }
 0x278   :  { %v385_v42 = vmul.f32 0.16666667, %v382_v40 }
 0x27a   :  { %v388_v44 = vmul.f32 %v385_v42, %v373_v31 }
 0x27c   :  { %v390_v46 = vpack.c.bf16 %v388_v44, %v388_v44 }
 0x27d   :  { %v341_v54 = vpop.f32.mrf.mxu3 }
 0x27e   :  { %v417_v48 = vsel %vm92_vm0, %v390_v46, 0  ;;  %v392_v0 = vadd.f32 %v341_v54, %v258_v53 }
 0x27f   :  { %425 = vmatpush.bf16.msrb.mxu0 %v417_v48 }
 0x283   :  { %426 = vmatpush.bf16.msrb.mxu0 %v389_v50 }
 0x285   :  { %v343_v56 = vpop.f32.mrf.mxu3 }
 0x286   :  { %598 = vmatmul.msk.bf16.vlgmr.msrb.gmra.mxu0 %vm409_vm4, %v612_v51  ;;  %v393_v2 = vadd.f32 %v343_v56, %v260_v55 }
 0x28d   :  { %v346_v58 = vpop.f32.mrf.mxu3 }
 0x28e   :  { %v394_v12 = vadd.f32 %v346_v58, %v263_v57 }
 0x295   :  { %v348_v60 = vpop.f32.mrf.mxu3 }
 0x296   :  { %599 = vmatmul.msk.bf16.gmra.mxu0 %vm409_vm4, %v613_v52 }
 0x303   :  { %v428_v61 = vpop.f32.mrf.mxu0 }
 0x304   :  { %v438_v4 = vadd.f32 %v428_v61, %v391_v39  ;;  %v497_v39 = vpop.permute.xlu2 %496 }
 0x306   :  { %v466_v10 = vadd.f32 %v449_v9, %v438_v4 }
 0x308   :  { %v470_v15 = vadd.f32 3.0, %v466_v10 }
 0x30a   :  { %v474_v21 = vmax.f32 %v470_v15, 0.0 }
 0x30b   :  { %v430_v63 = vpop.f32.mrf.mxu0 }
 0x30c   :  { %v439_v1 = vadd.f32 %v430_v63, %v392_v0  ;;  %v478_v26 = vmin.f32 %v474_v21, 6.0 }
 0x30e   :  { %v467_v7 = vadd.f32 %v454_v6, %v439_v1  ;;  %v482_v31 = vmul.f32 0.16666667, %v478_v26 }
 0x310   :  { %v471_v13 = vadd.f32 3.0, %v467_v7  ;;  %v486_v36 = vmul.f32 %v482_v31, %v466_v10 }
 0x312   :  { %v475_v19 = vmax.f32 %v471_v13, 0.0 }
 0x313   :  { %v433_v3 = vpop.f32.mrf.mxu0 }
 0x314   :  { %v440_v5 = vadd.f32 %v433_v3, %v393_v2  ;;  %v479_v24 = vmin.f32 %v475_v19, 6.0 }
 0x316   :  { %v468_v8 = vadd.f32 %v459_v62, %v440_v5  ;;  %v483_v29 = vmul.f32 0.16666667, %v479_v24 }
 0x318   :  { %v472_v11 = vadd.f32 3.0, %v468_v8  ;;  %v487_v34 = vmul.f32 %v483_v29, %v467_v7 }
 0x31a   :  { %v476_v16 = vmax.f32 %v472_v11, 0.0  ;;  %v490_v37 = vpack.c.bf16 %v487_v34, %v486_v36 }
 0x31b   :  { %v435_v14 = vpop.f32.mrf.mxu0 }
 0x31c   :  { %v441_v17 = vadd.f32 %v435_v14, %v394_v12  ;;  %v480_v22 = vmin.f32 %v476_v16, 6.0 }
 0x31e   :  { %v469_v20 = vadd.f32 %v464_v18, %v441_v17  ;;  %v484_v27 = vmul.f32 0.16666667, %v480_v22 }
 0x320   :  { %v473_v23 = vadd.f32 3.0, %v469_v20  ;;  %v488_v32 = vmul.f32 %v484_v27, %v468_v8 }
 0x322   :  { %v477_v25 = vmax.f32 %v473_v23, 0.0 }
 0x324   :  { %v481_v28 = vmin.f32 %v477_v25, 6.0 }
 0x326   :  { %v485_v30 = vmul.f32 0.16666667, %v481_v28 }
 0x328   :  { %v489_v33 = vmul.f32 %v485_v30, %v469_v20 }
 0x32a   :  { %v491_v35 = vpack.c.bf16 %v489_v33, %v488_v32 }
 0x32c   :  { %508 = vmatpush.bf16.msra.mxu1 %v491_v35 }
 0x330   :  { %509 = vmatpush.bf16.msra.mxu1 %v490_v37 }
 0x333   :  { %600 = vmatmul.msk.bf16.vlgmr.msra.gmra.mxu1 %vm159_vm2, %v492_v38 }
 0x3b0   :  { %v511_v40 = vpop.f32.mrf.mxu1 }
 0x3b1   :  { %v512_v41 = vadd.f32 %v511_v40, %v497_v39 }
 0x3b3   :  { %621 = vtanh.f32 %v512_v41 }
 0x3b8   :  { %v513_v42 = vpop.f32.mrf.mxu1 }
 0x3b9   :  { %v622_v43 = vpop.eup %621 }
 0x3ba   :  { %516 = vst [vmem:[#allocation2] sm:$0xff] %v622_v43 }
 0x3bb   :  { %527 = dma.vmem_to_hbm [thread:$0]  %s523_s2, 128, %s525_s29, [#allocation3]  }
 0x3bc   :  { %647 = dma.done.wait [#allocation3], 128  }
 0x3bd   :  { %648 = vsyncadd [#allocation3], 4294967168 }
 0x3be   :  { %532 = vsyncpa [#allocation3], 1 }

</bundles_post_ra>
